<compile_context>
chip_gen: v7x
topology: tpu7x:2x2x1
jax: 0.10.0
libtpu: 0.0.40
codegen_flags: <defaults>
</compile_context>

<pallas_src>
import math

import jax
import jax.numpy as jnp
from jax.experimental import pallas as pl
from jax.experimental.pallas import tpu as pltpu


_GELU_C = math.sqrt(2.0 / math.pi)


def _gelu_tanh(x):
    # GELU tanh approximation (matches nn.GELU(approximate='tanh')), with the
    # cubic folded as x * (1 + 0.044715*x*x) -> one fewer multiply per element.
    return 0.5 * x * (1.0 + jnp.tanh(_GELU_C * x * (1.0 + 0.044715 * x * x)))


def _round_up(x, m):
    return (x + m - 1) // m * m


def _chip_vmem_capacity_bytes():
    try:
        return int(pltpu.get_tpu_info().vmem_capacity_bytes)
    except Exception:  # pragma: no cover - fallback if query unavailable
        return 128 * 1024 * 1024


def ffn_kernel(x_ref, w1_ref, b1_ref, w2_ref, b2_ref, o_ref, acc_ref):
    # Grid = (M tiles [parallel], H tiles [arbitrary reduction]).
    k = pl.program_id(1)

    @pl.when(k == 0)
    def _init():
        acc_ref[...] = jnp.zeros_like(acc_ref)

    # First matmul for this H tile: MXU consumes the native dtype (bf16 stays
    # bf16), f32 accumulation. Bias + GELU in f32.
    h = jnp.dot(x_ref[...], w1_ref[...], preferred_element_type=jnp.float32)
    h = h + b1_ref[...].astype(jnp.float32)            # (tm, th) + (1, th)
    g = _gelu_tanh(h)                                  # tanh rides the EUP slot

    # Second matmul: accumulate the partial (tm, D_out) contribution in f32.
    acc_ref[...] += jnp.dot(g.astype(w2_ref.dtype), w2_ref[...],
                            preferred_element_type=jnp.float32)

    @pl.when(k == pl.num_programs(1) - 1)
    def _finalize():
        y = acc_ref[...] + b2_ref[...].astype(jnp.float32)
        o_ref[...] = y.astype(o_ref.dtype)


def ffn_pallas(x, w1, b1, w2, b2, *, tm=None, th=None, matmul_dtype=None,
               vmem_limit_bytes=None):
    """Fused FFN: GELU_tanh(x @ w1 + b1) @ w2 + b2.

    x:  (B, S, D_in)
    w1: (D_in, H),  b1: (H,)       (transpose of PyTorch nn.Linear.weight)
    w2: (H, D_out), b2: (D_out,)
    matmul_dtype: optional dtype (e.g. jnp.bfloat16) to cast x/w1/w2 to for the
        MXU dots; accumulation stays f32 and the output keeps x's dtype.
    """
    B, S, D_in = x.shape
    H = w1.shape[1]
    D_out = w2.shape[1]
    M = B * S
    out_dtype = x.dtype
    out_itemsize = jnp.dtype(out_dtype).itemsize

    if matmul_dtype is not None:
        x = x.astype(matmul_dtype)
        w1 = w1.astype(matmul_dtype)
        w2 = w2.astype(matmul_dtype)
    mm_itemsize = jnp.dtype(x.dtype).itemsize
    sub_align = 16 if mm_itemsize < 4 else 8

    # ---- Generation-aware VMEM limit & tile targets --------------------------
    vmem_cap = _chip_vmem_capacity_bytes()
    small_vmem_chip = vmem_cap < 100 * 1024 * 1024   # v7x-like: 64 MiB/TC, 2 TCs
    if vmem_limit_bytes is None:
        vmem_limit_bytes = (52 * 1024 * 1024 if small_vmem_chip
                            else 100 * 1024 * 1024)
    budget = max(vmem_limit_bytes - 6 * 1024 * 1024, 8 * 1024 * 1024)

    # Lane-dense feature dims. Zero padding is inert: padded D_in/H columns
    # contribute 0 through both matmuls (GELU(0)=0 with zero b1 pad, and the
    # matching w2 rows are 0); padded D_out / M entries are sliced off.
    d_in_p = _round_up(D_in, 128)
    d_out_p = _round_up(D_out, 128)
    h_p = _round_up(H, 128)
    if h_p > 512:
        h_p = _round_up(H, 512)          # force th=512 instead of a 128 fallback
    if th is None:
        th = min(512, h_p)

    if tm is None:
        tm_target = 256 if small_vmem_chip else 512
        tm = min(tm_target, _round_up(M, sub_align))
    tm = max(sub_align, _round_up(tm, sub_align))

    def _vmem_bytes(tm_, th_):
        return (2 * tm_ * d_in_p * mm_itemsize        # x tile (double-buffered)
                + 2 * d_in_p * th_ * mm_itemsize      # w1 tile
                + 2 * 8 * th_ * mm_itemsize           # b1 (sublane-padded)
                + 2 * th_ * d_out_p * mm_itemsize     # w2 tile
                + 2 * 8 * d_out_p * mm_itemsize       # b2
                + 2 * tm_ * d_out_p * out_itemsize    # output tile
                + tm_ * d_out_p * 4)                  # f32 accumulator

    # Auto-shrink tm (then th) until the working set fits the chip's VMEM.
    while _vmem_bytes(tm, th) > budget:
        if tm > 128:
            tm = max(sub_align, _round_up(tm // 2, sub_align))
        elif th > 128:
            th //= 2
        elif tm > sub_align:
            tm = max(sub_align, _round_up(tm // 2, sub_align))
        else:
            break

    # Megacore: on 2-TensorCore chips make sure the parallel M axis has >= 2
    # tiles so the second core isn't idle (halve tm instead of running 1 tile).
    if small_vmem_chip:
        while _round_up(M, tm) // tm < 2 and tm > sub_align:
            tm = max(sub_align, _round_up(tm // 2, sub_align))

    m_p = _round_up(M, tm)

    x2d = x.reshape(M, D_in)
    x2d = jnp.pad(x2d, ((0, m_p - M), (0, d_in_p - D_in)))
    w1p = jnp.pad(w1, ((0, d_in_p - D_in), (0, h_p - H)))
    b1p = jnp.pad(b1, (0, h_p - H)).reshape(1, h_p)
    w2p = jnp.pad(w2, ((0, h_p - H), (0, d_out_p - D_out)))
    b2p = jnp.pad(b2, (0, d_out_p - D_out)).reshape(1, d_out_p)

    grid = (m_p // tm, h_p // th)
    num_m_tiles = grid[0]

    # Cost estimate: weights (w1/b1/w2/b2) are re-streamed once per M tile.
    w_bytes = (w1p.size * w1p.dtype.itemsize + b1p.size * b1p.dtype.itemsize
               + w2p.size * w2p.dtype.itemsize + b2p.size * b2p.dtype.itemsize)
    bytes_accessed = (x2d.size * x2d.dtype.itemsize
                      + num_m_tiles * w_bytes
                      + m_p * d_out_p * out_itemsize)
    cost = pl.CostEstimate(
        flops=2 * m_p * (d_in_p * h_p + h_p * d_out_p),
        transcendentals=m_p * h_p,
        bytes_accessed=bytes_accessed,
    )

    out2d = pl.pallas_call(
        ffn_kernel,
        out_shape=jax.ShapeDtypeStruct((m_p, d_out_p), out_dtype),
        grid_spec=pltpu.PrefetchScalarGridSpec(
            num_scalar_prefetch=0,
            grid=grid,
            in_specs=[
                pl.BlockSpec((tm, d_in_p), lambda i, k: (i, 0)),   # x tile
                pl.BlockSpec((d_in_p, th), lambda i, k: (0, k)),   # w1 H-tile
                pl.BlockSpec((1, th), lambda i, k: (0, k)),        # b1 H-tile
                pl.BlockSpec((th, d_out_p), lambda i, k: (k, 0)),  # w2 H-tile
                pl.BlockSpec((1, d_out_p), lambda i, k: (0, 0)),   # b2
            ],
            out_specs=pl.BlockSpec((tm, d_out_p), lambda i, k: (i, 0)),
            scratch_shapes=[pltpu.VMEM((tm, d_out_p), jnp.float32)],
        ),
        compiler_params=pltpu.CompilerParams(
            dimension_semantics=("parallel", "arbitrary"),
            vmem_limit_bytes=vmem_limit_bytes,
        ),
        cost_estimate=cost,
    )(x2d, w1p, b1p, w2p, b2p)

    return out2d[:M, :D_out].reshape(B, S, D_out)


def ffn_reference(x, w1, b1, w2, b2):
    h = jnp.einsum("bsd,dh->bsh", x, w1) + b1
    g = _gelu_tanh(h)
    return jnp.einsum("bsh,ho->bso", g, w2) + b2


def _linear_init(kw, kb, fan_in, fan_out, dtype=jnp.float32):
    # Mimic nn.Linear default init: U(-1/sqrt(fan_in), 1/sqrt(fan_in)).
    lim = 1.0 / math.sqrt(fan_in)
    w = jax.random.uniform(kw, (fan_in, fan_out), minval=-lim, maxval=lim,
                           dtype=dtype)
    b = jax.random.uniform(kb, (fan_out,), minval=-lim, maxval=lim,
                           dtype=dtype)
    return w, b


def _run_case(key, B, S, d_in, hidden, d_out, *, dtype=jnp.float32,
              atol=2e-5, rtol=2e-5, **kw):
    kx, kw1, kb1, kw2, kb2 = jax.random.split(key, 5)
    x = jax.random.normal(kx, (B, S, d_in), dtype=jnp.float32)
    w1, b1 = _linear_init(kw1, kb1, d_in, hidden)
    w2, b2 = _linear_init(kw2, kb2, hidden, d_out)

    x = x.astype(dtype)
    w1, b1, w2, b2 = (a.astype(dtype) for a in (w1, b1, w2, b2))

    out = jax.block_until_ready(ffn_pallas(x, w1, b1, w2, b2, **kw))
    ref = ffn_reference(*(a.astype(jnp.float32) for a in (x, w1, b1, w2, b2)))
    assert out.shape == (B, S, d_out)
    assert jnp.allclose(out.astype(jnp.float32), ref, atol=atol, rtol=rtol), \
        "mismatch vs reference"


if __name__ == "__main__":
    key = jax.random.PRNGKey(0)
    k1, k2, k3 = jax.random.split(key, 3)

    # Case 1: FFN(in=32, hidden=64, out=32), B=2, S=8 — tiny shapes, heavy
    # feature padding to 128 lanes, single H tile.
    _run_case(k1, B=2, S=8, d_in=32, hidden=64, d_out=32)

    # Case 2: ragged M (B*S=100, padded) with an explicit small th to exercise
    # the multi-step H accumulation path (hidden=384 -> 3 H tiles of 128).
    _run_case(k2, B=4, S=25, d_in=48, hidden=384, d_out=72, th=128)

    # Case 3: bf16 operands — native-dtype MXU dots with f32 accumulation
    # (looser tolerance for low precision).
    _run_case(k3, B=2, S=16, d_in=64, hidden=256, d_out=64,
              dtype=jnp.bfloat16, atol=6e-2, rtol=6e-2)

    print("KERNEL_OK")
</pallas_src>

<mosaic_0001>
module attributes {stable_mosaic.version = 11 : i64} {
  func.func @ffn_kernel(%arg0: i32, %arg1: i32, %arg2: memref<16x128xf32, #tpu.memory_space<vmem>>, %arg3: memref<128x128xf32, #tpu.memory_space<vmem>>, %arg4: memref<1x128xf32, #tpu.memory_space<vmem>>, %arg5: memref<128x128xf32, #tpu.memory_space<vmem>>, %arg6: memref<1x128xf32, #tpu.memory_space<vmem>>, %arg7: memref<16x128xf32, #tpu.memory_space<vmem>>, %arg8: memref<16x128xf32, #tpu.memory_space<vmem>>) attributes {dimension_semantics = [#tpu.dimension_semantics<parallel>, #tpu.dimension_semantics<arbitrary>], iteration_bounds = array<i64: 1, 1>, scalar_prefetch = 0 : i64, scratch_operands = 1 : i64, tpu.core_type = #tpu.core_type<tc>, window_params = [{transform_indices = @transform_0, window_bounds = array<i64: 16, 128>}, {transform_indices = @transform_1, window_bounds = array<i64: 128, 128>}, {transform_indices = @transform_2, window_bounds = array<i64: 1, 128>}, {transform_indices = @transform_3, window_bounds = array<i64: 128, 128>}, {pipeline_mode = #tpu.pipeline_mode<synchronous>, transform_indices = @transform_4, window_bounds = array<i64: 1, 128>}, {transform_indices = @transform_5, window_bounds = array<i64: 16, 128>}]} {
    %c0_i32 = arith.constant 0 : i32
    %0 = arith.cmpi eq, %arg1, %c0_i32 : i32
    %1 = arith.extui %0 : i1 to i32
    %c0_i32_0 = arith.constant 0 : i32
    %2 = arith.cmpi ne, %1, %c0_i32_0 : i32
    scf.if %2 {
      %cst_20 = arith.constant 0.000000e+00 : f32
      %31 = vector.broadcast %cst_20 : f32 to vector<16x128xf32>
      %c0_21 = arith.constant 0 : index
      %c0_22 = arith.constant 0 : index
      %32 = vector.load %arg8[%c0_21, %c0_22] : memref<16x128xf32, #tpu.memory_space<vmem>>, vector<16x128xf32>
      tpu.vector_store %arg8[%c0_21, %c0_22], %31 {strides = array<i32>} : memref<16x128xf32, #tpu.memory_space<vmem>>, vector<16x128xf32>,
    } else {
    }
    %c0 = arith.constant 0 : index
    %c0_1 = arith.constant 0 : index
    %3 = vector.load %arg2[%c0, %c0_1] : memref<16x128xf32, #tpu.memory_space<vmem>>, vector<16x128xf32>
    %c0_2 = arith.constant 0 : index
    %c0_3 = arith.constant 0 : index
    %4 = vector.load %arg3[%c0_2, %c0_3] : memref<128x128xf32, #tpu.memory_space<vmem>>, vector<128x128xf32>
    %cst = arith.constant dense<0.000000e+00> : vector<16x128xf32>
    %5 = tpu.matmul %3, %4, %cst {dimension_numbers = #tpu.dot_dimension_numbers<[1], [0], [0], [1], [0, 0, 1, 1], [], []>} : vector<16x128xf32>, vector<128x128xf32>, vector<16x128xf32> -> vector<16x128xf32>
    %c0_4 = arith.constant 0 : index
    %c0_5 = arith.constant 0 : index
    %6 = vector.load %arg4[%c0_4, %c0_5] : memref<1x128xf32, #tpu.memory_space<vmem>>, vector<1x128xf32>
    %7 = vector.broadcast %6 : vector<1x128xf32> to vector<16x128xf32>
    %8 = arith.addf %5, %7 : vector<16x128xf32>
    %cst_6 = arith.constant 5.000000e-01 : f32
    %9 = vector.broadcast %cst_6 : f32 to vector<16x128xf32>
    %10 = arith.mulf %9, %8 : vector<16x128xf32>
    %cst_7 = arith.constant 0.797884583 : f32
    %11 = vector.broadcast %cst_7 : f32 to vector<16x128xf32>
    %12 = arith.mulf %11, %8 : vector<16x128xf32>
    %cst_8 = arith.constant 4.471500e-02 : f32
    %13 = vector.broadcast %cst_8 : f32 to vector<16x128xf32>
    %14 = arith.mulf %13, %8 : vector<16x128xf32>
    %15 = arith.mulf %14, %8 : vector<16x128xf32>
    %cst_9 = arith.constant 1.000000e+00 : f32
    %16 = vector.broadcast %cst_9 : f32 to vector<16x128xf32>
    %17 = arith.addf %16, %15 : vector<16x128xf32>
    %18 = arith.mulf %12, %17 : vector<16x128xf32>
    %19 = math.tanh %18 : vector<16x128xf32>
    %cst_10 = arith.constant 1.000000e+00 : f32
    %20 = vector.broadcast %cst_10 : f32 to vector<16x128xf32>
    %21 = arith.addf %20, %19 : vector<16x128xf32>
    %22 = arith.mulf %10, %21 : vector<16x128xf32>
    %c0_11 = arith.constant 0 : index
    %c0_12 = arith.constant 0 : index
    %23 = vector.load %arg8[%c0_11, %c0_12] : memref<16x128xf32, #tpu.memory_space<vmem>>, vector<16x128xf32>
    %c0_13 = arith.constant 0 : index
    %c0_14 = arith.constant 0 : index
    %24 = vector.load %arg5[%c0_13, %c0_14] : memref<128x128xf32, #tpu.memory_space<vmem>>, vector<128x128xf32>
    %cst_15 = arith.constant dense<0.000000e+00> : vector<16x128xf32>
    %25 = tpu.matmul %22, %24, %cst_15 {dimension_numbers = #tpu.dot_dimension_numbers<[1], [0], [0], [1], [0, 0, 1, 1], [], []>} : vector<16x128xf32>, vector<128x128xf32>, vector<16x128xf32> -> vector<16x128xf32>
    %26 = arith.addf %23, %25 : vector<16x128xf32>
    %c0_16 = arith.constant 0 : index
    %c0_17 = arith.constant 0 : index
    %27 = vector.load %arg8[%c0_16, %c0_17] : memref<16x128xf32, #tpu.memory_space<vmem>>, vector<16x128xf32>
    tpu.vector_store %arg8[%c0_16, %c0_17], %26 {strides = array<i32>} : memref<16x128xf32, #tpu.memory_space<vmem>>, vector<16x128xf32>,
    %c0_i32_18 = arith.constant 0 : i32
    %28 = arith.cmpi eq, %arg1, %c0_i32_18 : i32
    %29 = arith.extui %28 : i1 to i32
    %c0_i32_19 = arith.constant 0 : i32
    %30 = arith.cmpi ne, %29, %c0_i32_19 : i32
    scf.if %30 {
      %c0_20 = arith.constant 0 : index
      %c0_21 = arith.constant 0 : index
      %31 = vector.load %arg8[%c0_20, %c0_21] : memref<16x128xf32, #tpu.memory_space<vmem>>, vector<16x128xf32>
      %c0_22 = arith.constant 0 : index
      %c0_23 = arith.constant 0 : index
      %32 = vector.load %arg6[%c0_22, %c0_23] : memref<1x128xf32, #tpu.memory_space<vmem>>, vector<1x128xf32>
      %33 = vector.broadcast %32 : vector<1x128xf32> to vector<16x128xf32>
      %34 = arith.addf %31, %33 : vector<16x128xf32>
      %c0_24 = arith.constant 0 : index
      %c0_25 = arith.constant 0 : index
      %35 = vector.load %arg7[%c0_24, %c0_25] : memref<16x128xf32, #tpu.memory_space<vmem>>, vector<16x128xf32>
      tpu.vector_store %arg7[%c0_24, %c0_25], %34 {strides = array<i32>} : memref<16x128xf32, #tpu.memory_space<vmem>>, vector<16x128xf32>,
    } else {
    }
    return
  }
  func.func @transform_0(%arg0: i32, %arg1: i32) -> (i32, i32) {
    %c0_i32 = arith.constant 0 : i32
    %c0_i32_0 = arith.constant 0 : i32
    return %arg0, %c0_i32 : i32, i32
  }
  func.func @transform_1(%arg0: i32, %arg1: i32) -> (i32, i32) {
    %c0_i32 = arith.constant 0 : i32
    %c0_i32_0 = arith.constant 0 : i32
    return %c0_i32, %arg1 : i32, i32
  }
  func.func @transform_2(%arg0: i32, %arg1: i32) -> (i32, i32) {
    %c0_i32 = arith.constant 0 : i32
    %c0_i32_0 = arith.constant 0 : i32
    return %c0_i32, %arg1 : i32, i32
  }
  func.func @transform_3(%arg0: i32, %arg1: i32) -> (i32, i32) {
    %c0_i32 = arith.constant 0 : i32
    %c0_i32_0 = arith.constant 0 : i32
    return %arg1, %c0_i32 : i32, i32
  }
  func.func @transform_4(%arg0: i32, %arg1: i32) -> (i32, i32) {
    %c0_i32 = arith.constant 0 : i32
    %c0_i32_0 = arith.constant 0 : i32
    %c0_i32_1 = arith.constant 0 : i32
    return %c0_i32, %c0_i32_0 : i32, i32
  }
  func.func @transform_5(%arg0: i32, %arg1: i32) -> (i32, i32) {
    %c0_i32 = arith.constant 0 : i32
    %c0_i32_0 = arith.constant 0 : i32
    return %arg0, %c0_i32 : i32, i32
  }
}

</mosaic_0001>

<bundles_post_ra>
// kernel: tpu_custom_call.1
= control target key start
LH: loop header
LB: loop body
LE: loop exit
PB: predicated region body
PF: predicated region fallthrough
CT: control target
= control target key end

     0   :  { %10 = vsyncpa [#allocation4], 0  ;;  %s794_s0 = inlined_call_operand.hbm [shape: f32[16,128], index: 0, kind: input, shape index: {}]   ;;  %s795_s1 = inlined_call_operand.hbm [shape: f32[128,128], index: 1, kind: input, shape index: {}]   ;;  %s796_s2 = inlined_call_operand.hbm [shape: f32[1,128], index: 2, kind: input, shape index: {}]   ;;  %s797_s3 = inlined_call_operand.hbm [shape: f32[128,128], index: 3, kind: input, shape index: {}]   ;;  %s798_s4 = inlined_call_operand.hbm [shape: f32[1,128], index: 4, kind: input, shape index: {}]   ;;  %s799_s5 = inlined_call_operand.hbm [shape: f32[16,128], index: 5, kind: output, shape index: {}]  }
   0x1   :  { %11 = vsyncpa [#allocation7], 0 }
   0x2   :  { %12 = vsyncpa [#allocation10], 0 }
   0x3   :  { %13 = vsyncpa [#allocation5], 0  ;;  %s665_s18 = smov [#allocation6]   ;;  %s666_s20 = smov [#allocation9]  }
   0x4   :  { %s31_s19 = sshll.u32 %s665_s18, 4  ;;  %s53_s21 = sshll.u32 %s666_s20, 4  ;;  %s32_s19 = int_to_ptr.vmem [resolvable:$true] %s31_s19  ;;  %s703_s21 = int_to_ptr.vmem [resolvable:$true] %s53_s21 }
   0x5   :  { %s525_s24 = scalar_lea.hbm %s795_s1, 2048 }
   0x6   :  { %p526_p0 = scmp.ne.s32.totalorder %s795_s1, %s525_s24  ;;  %p529_p1 = scmp.lt.u32.totalorder %s525_s24, %s795_s1 }
   0x8   :  { %p531_p2 = pnand %p529_p1, %p526_p0 }
   0xa   :  { %534 = shalt.err (!%p531_p2)
}
   0xb   :  { %s535_s29 = scalar_lea.vmem %s32_s19, 2048  ;;  %p540_p4 = scmp.lt.s32.totalorder %s32_s19, %s32_s19 }
   0xc   :  { %p536_p3 = scmp.ne.s32.totalorder %s32_s19, %s535_s29  ;;  %p541_p5 = scmp.lt.s32.totalorder %s535_s29, %s535_s29 }
   0xe   :  { %p542_p6 = por %p541_p5, %p540_p4 }
  0x10   :  { %p543_p7 = pnand %p542_p6, %p536_p3 }
  0x12   :  { %546 = shalt.err (!%p543_p7)
}
  0x13   :  { %s667_s30 = smov 128   ;;  %s668_s6 = smov 8  }
  0x14   :  { %37 = dma.hbm_to_vmem [thread:$0]  %s795_s1, 2048, %s32_s19, [#allocation7], %s667_s30, %s667_s30, %s668_s6  }
  0x15   :  { %s547_s11 = scalar_lea.hbm %s797_s3, 2048 }
  0x16   :  { %p548_p8 = scmp.ne.s32.totalorder %s797_s3, %s547_s11  ;;  %p551_p9 = scmp.lt.u32.totalorder %s547_s11, %s797_s3 }
  0x18   :  { %p553_p10 = pnand %p551_p9, %p548_p8 }
  0x1a   :  { %556 = shalt.err (!%p553_p10)
}
  0x1b   :  { %s557_s16 = scalar_lea.vmem %s703_s21, 2048  ;;  %p562_p12 = scmp.lt.s32.totalorder %s703_s21, %s703_s21 }
  0x1c   :  { %p558_p11 = scmp.ne.s32.totalorder %s703_s21, %s557_s16  ;;  %p563_p13 = scmp.lt.s32.totalorder %s557_s16, %s557_s16 }
  0x1e   :  { %p564_p0 = por %p563_p13, %p562_p12 }
  0x20   :  { %p565_p1 = pnand %p564_p0, %p558_p11 }
  0x22   :  { %568 = shalt.err (!%p565_p1)
}
  0x23   :  { %59 = dma.hbm_to_vmem [thread:$0]  %s797_s3, 2048, %s703_s21, [#allocation10], %s667_s30, %s667_s30, %s668_s6  }
  0x24   :  { %s669_s18 = smov [#allocation3]   ;;  %s670_s20 = smov [#allocation8]  }
  0x25   :  { %s19_s19 = sshll.u32 %s669_s18, 4  ;;  %s44_s22 = sshll.u32 %s670_s20, 4  ;;  %s20_s19 = int_to_ptr.vmem [resolvable:$true] %s19_s19  ;;  %s45_s22 = int_to_ptr.vmem [resolvable:$true] %s44_s22 }
  0x26   :  { %s569_s25 = scalar_lea.hbm %s794_s0, 256 }
  0x27   :  { %p570_p2 = scmp.ne.s32.totalorder %s794_s0, %s569_s25  ;;  %p573_p3 = scmp.lt.u32.totalorder %s569_s25, %s794_s0 }
  0x29   :  { %p575_p4 = pnand %p573_p3, %p570_p2 }
  0x2b   :  { %578 = shalt.err (!%p575_p4)
}
  0x2c   :  { %s579_s3 = scalar_lea.vmem %s20_s19, 256  ;;  %p584_p6 = scmp.lt.s32.totalorder %s20_s19, %s20_s19 }
  0x2d   :  { %p580_p5 = scmp.ne.s32.totalorder %s20_s19, %s579_s3  ;;  %p585_p7 = scmp.lt.s32.totalorder %s579_s3, %s579_s3 }
  0x2f   :  { %p586_p8 = por %p585_p7, %p584_p6 }
  0x31   :  { %p587_p9 = pnand %p586_p8, %p580_p5 }
  0x33   :  { %590 = shalt.err (!%p587_p9)
}
  0x34   :  { %25 = dma.hbm_to_vmem [thread:$0]  %s794_s0, 256, %s20_s19, [#allocation4], %s667_s30, %s667_s30, %s668_s6  }
  0x35   :  { %s591_s10 = scalar_lea.hbm %s796_s2, 16 }
  0x36   :  { %p592_p10 = scmp.ne.s32.totalorder %s796_s2, %s591_s10  ;;  %p595_p11 = scmp.lt.u32.totalorder %s591_s10, %s796_s2 }
  0x38   :  { %p597_p12 = pnand %p595_p11, %p592_p10 }
  0x3a   :  { %600 = shalt.err (!%p597_p12)
}
  0x3b   :  { %s601_s15 = scalar_lea.vmem %s45_s22, 16  ;;  %s605_s16 = scalar_lea.vmem %s45_s22, 32 }
  0x3c   :  { %p602_p13 = scmp.ne.s32.totalorder %s45_s22, %s601_s15  ;;  %p606_p0 = scmp.lt.s32.totalorder %s45_s22, %s45_s22 }
  0x3d   :  { %p607_p1 = scmp.lt.s32.totalorder %s605_s16, %s601_s15 }
  0x3f   :  { %p608_p2 = por %p607_p1, %p606_p0 }
  0x41   :  { %p609_p3 = pnand %p608_p2, %p602_p13 }
  0x43   :  { %612 = shalt.err (!%p609_p3)
}
  0x44   :  { %47 = dma.hbm_to_vmem [thread:$0]  %s796_s2, 16, %s45_s22, [#allocation7]  }
  0x45   :  { %s671_s17 = smov [#allocation11]   ;;  %s613_s23 = scalar_lea.hbm %s798_s4, 16 }
  0x46   :  { %s66_s18 = sshll.u32 %s671_s17, 4  ;;  %p614_p4 = scmp.ne.s32.totalorder %s798_s4, %s613_s23  ;;  %s67_s18 = int_to_ptr.vmem [resolvable:$true] %s66_s18 }
  0x47   :  { %p617_p5 = scmp.lt.u32.totalorder %s613_s23, %s798_s4 }
  0x49   :  { %p619_p6 = pnand %p617_p5, %p614_p4 }
  0x4b   :  { %622 = shalt.err (!%p619_p6)
}
  0x4c   :  { %s623_s28 = scalar_lea.vmem %s67_s18, 16  ;;  %s627_s2 = scalar_lea.vmem %s67_s18, 32 }
  0x4d   :  { %p624_p7 = scmp.ne.s32.totalorder %s67_s18, %s623_s28  ;;  %p628_p8 = scmp.lt.s32.totalorder %s67_s18, %s67_s18 }
  0x4e   :  { %p629_p9 = scmp.lt.s32.totalorder %s627_s2, %s623_s28 }
  0x50   :  { %p630_p10 = por %p629_p9, %p628_p8 }
  0x52   :  { %p631_p11 = pnand %p630_p10, %p624_p7 }
  0x54   :  { %634 = shalt.err (!%p631_p11)
}
  0x55   :  { %69 = dma.hbm_to_vmem [thread:$0]  %s798_s4, 16, %s67_s18, [#allocation10]  }
  0x56   :  { %657 = dma.done.wait [#allocation4], 256  }
  0x57   :  { %658 = vsyncadd [#allocation4], 4294967040 }
  0x58   :  { %659 = dma.done.wait [#allocation7], 2064  }
  0x59   :  { %660 = vsyncadd [#allocation7], 4294965232 }
  0x5a   :  { %661 = dma.done.wait [#allocation10], 2064  }
  0x5b   :  { %662 = vsyncadd [#allocation10], 4294965232  ;;  %v93_v0 = vld [vmem:[#allocation6] sm:$0xff]  ;;  %v94_v1 = vld [vmem:[#allocation6 + $0x8] sm:$0xff]  ;;  %s672_s4 = smov [#allocation12]  }
  0x5c   :  { %v95_v2 = vld [vmem:[#allocation6 + $0x10] sm:$0xff]  ;;  %v449_v3 = vpack.c.bf16 %v94_v1, %v93_v0  ;;  %v96_v4 = vld [vmem:[#allocation6 + $0x18] sm:$0xff]  ;;  %v97_v6 = vld [vmem:[#allocation6 + $0x20] sm:$0xff]  ;;  %s327_s3 = sshll.u32 %s672_s4, 4  ;;  %s328_s3 = int_to_ptr.vmem [resolvable:$true] %s327_s3 }
  0x5d   :  { %v453_v5 = vpack.c.bf16 %v96_v4, %v95_v2  ;;  %v98_v7 = vld [vmem:[#allocation6 + $0x28] sm:$0xff]  ;;  %v99_v9 = vld [vmem:[#allocation6 + $0x30] sm:$0xff]  ;;  %v100_v11 = vld [vmem:[#allocation6 + $0x38] sm:$0xff]  ;;  %s635_s21 = scalar_lea.vmem %s328_s3, 256  ;;  %p640_p13 = scmp.lt.s32.totalorder %s328_s3, %s328_s3 }
  0x5e   :  { %450 = vmatprep.subr.bf16.mxu0 %v449_v3  ;;  %v457_v8 = vpack.c.bf16 %v98_v7, %v97_v6  ;;  %v91_v10 = vld [vmem:[#allocation3] sm:$0xff]  ;;  %v211_v12 = vld [vmem:[#allocation9] sm:$0xff]  ;;  %v461_v15 = vpack.c.bf16 %v100_v11, %v99_v9  ;;  %v104_v20 = vld [vmem:[#allocation6 + $0x58] sm:$0xff]  ;;  %p636_p12 = scmp.ne.s32.totalorder %s328_s3, %s635_s21  ;;  %p641_p0 = scmp.lt.s32.totalorder %s635_s21, %s635_s21 }
  0x5f   :  { %452 = vmatpush3.bf16.msra.mxu0 %v449_v3  ;;  %411 = vmatprep.mubr.f32.mxu0 %v91_v10  ;;  %v212_v13 = vld [vmem:[#allocation9 + $0x8] sm:$0xff]  ;;  %v101_v16 = vld [vmem:[#allocation6 + $0x40] sm:$0xff]  ;;  %v108_v26 = vld [vmem:[#allocation6 + $0x78] sm:$0xff] }
  0x60   :  { %454 = vmatprep.subr.bf16.mxu0 %v453_v5  ;;  %v481_v14 = vpack.c.bf16 %v212_v13, %v211_v12  ;;  %v102_v17 = vld [vmem:[#allocation6 + $0x48] sm:$0xff]  ;;  %v103_v19 = vld [vmem:[#allocation6 + $0x50] sm:$0xff]  ;;  %v105_v22 = vld [vmem:[#allocation6 + $0x60] sm:$0xff]  ;;  %p642_p1 = por %p641_p0, %p640_p13 }
  0x61   :  { %v465_v18 = vpack.c.bf16 %v102_v17, %v101_v16  ;;  %v469_v21 = vpack.c.bf16 %v104_v20, %v103_v19  ;;  %v106_v23 = vld [vmem:[#allocation6 + $0x68] sm:$0xff]  ;;  %v107_v25 = vld [vmem:[#allocation6 + $0x70] sm:$0xff]  ;;  %v92_v28 = vld [vmem:[#allocation3 + $0x8] sm:$0xff] }
  0x62   :  { %482 = vmatprep.subr.bf16.mxu1 %v481_v14  ;;  %v473_v24 = vpack.c.bf16 %v106_v23, %v105_v22  ;;  %v477_v27 = vpack.c.bf16 %v108_v26, %v107_v25  ;;  %v213_v29 = vld [vmem:[#allocation9 + $0x10] sm:$0xff]  ;;  %v214_v30 = vld [vmem:[#allocation9 + $0x18] sm:$0xff]  ;;  %v215_v32 = vld [vmem:[#allocation9 + $0x20] sm:$0xff]  ;;  %p643_p2 = pnand %p642_p1, %p636_p12 }
  0x63   :  { %456 = vmatpush3.bf16.msra.mxu0 %v453_v5  ;;  %484 = vmatpush3.bf16.msra.mxu1 %v481_v14  ;;  %v485_v31 = vpack.c.bf16 %v214_v30, %v213_v29  ;;  %v216_v33 = vld [vmem:[#allocation9 + $0x28] sm:$0xff]  ;;  %v217_v35 = vld [vmem:[#allocation9 + $0x30] sm:$0xff]  ;;  %v218_v36 = vld [vmem:[#allocation9 + $0x38] sm:$0xff] }
  0x64   :  { %458 = vmatprep.subr.bf16.mxu0 %v457_v8  ;;  %v489_v34 = vpack.c.bf16 %v216_v33, %v215_v32  ;;  %v493_v37 = vpack.c.bf16 %v218_v36, %v217_v35  ;;  %v219_v38 = vld [vmem:[#allocation9 + $0x40] sm:$0xff]  ;;  %v220_v39 = vld [vmem:[#allocation9 + $0x48] sm:$0xff]  ;;  %v221_v40 = vld [vmem:[#allocation9 + $0x50] sm:$0xff] }
  0x65   :  { %486 = vmatprep.subr.bf16.mxu1 %v485_v31  ;;  %v497_v41 = vpack.c.bf16 %v220_v39, %v219_v38  ;;  %v222_v42 = vld [vmem:[#allocation9 + $0x58] sm:$0xff]  ;;  %v223_v44 = vld [vmem:[#allocation9 + $0x60] sm:$0xff]  ;;  %v224_v45 = vld [vmem:[#allocation9 + $0x68] sm:$0xff] }
  0x66   :  { %v501_v43 = vpack.c.bf16 %v222_v42, %v221_v40  ;;  %v505_v46 = vpack.c.bf16 %v224_v45, %v223_v44  ;;  %v225_v47 = vld [vmem:[#allocation9 + $0x70] sm:$0xff]  ;;  %v226_v48 = vld [vmem:[#allocation9 + $0x78] sm:$0xff]  ;;  %v342_v9 = vld [vmem:[#allocation11] ss:$0 sm:$0xff] }
  0x67   :  { %460 = vmatpush3.bf16.msra.mxu0 %v457_v8  ;;  %488 = vmatpush3.bf16.msra.mxu1 %v485_v31  ;;  %v509_v49 = vpack.c.bf16 %v226_v48, %v225_v47  ;;  %v341_v50 = vld [vmem:[#allocation8] ss:$0 sm:$0xff] }
  0x68   :  { %462 = vmatprep.subr.bf16.mxu0 %v461_v15  ;;  %490 = vmatprep.subr.bf16.mxu1 %v489_v34 }
  0x6b   :  { %464 = vmatpush3.bf16.msra.mxu0 %v461_v15  ;;  %492 = vmatpush3.bf16.msra.mxu1 %v489_v34 }
  0x6c   :  { %466 = vmatprep.subr.bf16.mxu0 %v465_v18  ;;  %494 = vmatprep.subr.bf16.mxu1 %v493_v37 }
  0x6f   :  { %468 = vmatpush3.bf16.msra.mxu0 %v465_v18  ;;  %496 = vmatpush3.bf16.msra.mxu1 %v493_v37 }
  0x70   :  { %470 = vmatprep.subr.bf16.mxu0 %v469_v21  ;;  %498 = vmatprep.subr.bf16.mxu1 %v497_v41 }
  0x73   :  { %472 = vmatpush3.bf16.msra.mxu0 %v469_v21  ;;  %500 = vmatpush3.bf16.msra.mxu1 %v497_v41 }
  0x74   :  { %474 = vmatprep.subr.bf16.mxu0 %v473_v24  ;;  %502 = vmatprep.subr.bf16.mxu1 %v501_v43 }
  0x77   :  { %476 = vmatpush3.bf16.msra.mxu0 %v473_v24  ;;  %504 = vmatpush3.bf16.msra.mxu1 %v501_v43 }
  0x78   :  { %478 = vmatprep.subr.bf16.mxu0 %v477_v27  ;;  %506 = vmatprep.subr.bf16.mxu1 %v505_v46 }
  0x7b   :  { %480 = vmatpush3.bf16.msra.mxu0 %v477_v27  ;;  %508 = vmatpush3.bf16.msra.mxu1 %v505_v46 }
  0x7c   :  { %510 = vmatprep.subr.bf16.mxu1 %v509_v49 }
  0x7e   :  { %412 = vmatmul.mubr.f32.vlgmr.msra.gmra.mrb[0].mxu0 %v92_v28 }
  0x7f   :  { %512 = vmatpush3.bf16.msra.mxu1 %v509_v49 }
 0x151   :  { %v413_v51 = vpop.f32.mrb[0].mxu0 }
 0x152   :  { %v188_v52 = vadd.f32 %v413_v51, %v341_v50  ;;  %v182_v53 = vpop.f32.mrb[1].mxu0 }
 0x153   :  { %v183_v54 = vadd.f32 %v341_v50, %v182_v53 }
 0x154   :  { %v196_v55 = vmul.f32 0.044715, %v188_v52  ;;  %v194_v59 = vmul.f32 0.7978846, %v188_v52  ;;  %v192_v6 = vmul.f32 0.5, %v188_v52 }
 0x155   :  { %v195_v56 = vmul.f32 0.044715, %v183_v54  ;;  %v193_v61 = vmul.f32 0.7978846, %v183_v54  ;;  %v191_v4 = vmul.f32 0.5, %v183_v54 }
 0x156   :  { %v198_v57 = vmul.f32 %v196_v55, %v188_v52 }
 0x157   :  { %v197_v58 = vmul.f32 %v195_v56, %v183_v54 }
 0x158   :  { %v200_v60 = vadd.f32 1.0, %v198_v57 }
 0x159   :  { %v199_v62 = vadd.f32 1.0, %v197_v58 }
 0x15a   :  { %v202_v63 = vmul.f32 %v200_v60, %v194_v59 }
 0x15b   :  { %v201_v0 = vmul.f32 %v199_v62, %v193_v61 }
 0x15c   :  { %521 = vtanh.f32 %v202_v63 }
 0x15d   :  { %523 = vtanh.f32 %v201_v0 }
 0x166   :  { %v522_v1 = vpop.eup %521 }
 0x167   :  { %v524_v2 = vpop.eup %523  ;;  %v206_v3 = vadd.f32 1.0, %v522_v1 }
 0x168   :  { %v205_v5 = vadd.f32 1.0, %v524_v2 }
 0x169   :  { %v208_v8 = vmul.f32 %v206_v3, %v192_v6 }
 0x16a   :  { %v207_v7 = vmul.f32 %v205_v5, %v191_v4 }
 0x16c   :  { %446 = vmatprep.mubr.f32.mxu1 %v207_v7 }
 0x16d   :  { %447 = vmatmul.mubr.f32.vlgmr.msra.gmra.mrb[0].mxu1 %v208_v8 }
 0x240   :  { %v448_v10 = vpop.f32.mrb[0].mxu1 }
 0x241   :  { %v319_v11 = vadd.f32 %v448_v10, %v342_v9  ;;  %v293_v12 = vpop.f32.mrb[1].mxu1 }
 0x242   :  { %v318_v13 = vadd.f32 %v342_v9, %v293_v12 }
 0x243   :  { %321 = vst [vmem:[#allocation12 + $0x8] sm:$0xff] %v319_v11 }
 0x244   :  { %320 = vst [vmem:[#allocation12] sm:$0xff] %v318_v13 }
 0x245   :  { %646 = shalt.err (!%p643_p2)
}
 0x246   :  { %s647_s9 = scalar_lea.hbm %s799_s5, 256 }
 0x247   :  { %p648_p3 = scmp.ne.s32.totalorder %s799_s5, %s647_s9  ;;  %p651_p4 = scmp.lt.u32.totalorder %s647_s9, %s799_s5 }
 0x249   :  { %p653_p5 = pnand %p651_p4, %p648_p3 }
 0x24b   :  { %656 = shalt.err (!%p653_p5)
}
 0x24c   :  { %333 = dma.vmem_to_hbm [thread:$0]  %s328_s3, 256, %s799_s5, [#allocation5], %s667_s30, %s667_s30, %s668_s6  }
 0x24d   :  { %663 = dma.done.wait [#allocation5], 256  }
 0x24e   :  { %664 = vsyncadd [#allocation5], 4294967040 }
 0x24f   :  { %337 = vsyncpa [#allocation4], 1 }
 0x250   :  { %338 = vsyncpa [#allocation7], 1 }
 0x251   :  { %339 = vsyncpa [#allocation10], 1 }
 0x252   :  { %340 = vsyncpa [#allocation5], 1 }

</bundles_post_ra>
